<compile_context>
chip_gen: v7x
topology: tpu7x:2x2x1
jax: 0.10.0
libtpu: 0.0.40
codegen_flags: <defaults>
</compile_context>

<pallas_src>
import functools

import jax
import jax.numpy as jnp
from jax.experimental import pallas as pl
from jax.experimental.pallas import tpu as pltpu


def _round_up(x, m):
    return (x + m - 1) // m * m


def _pick_th(target, h_pad):
    """Largest multiple of 128 <= target that divides h_pad (>= 128)."""
    th = max(128, min((target // 128) * 128, h_pad))
    while h_pad % th:
        th -= 128
    return th


def _vmem_budget_bytes():
    """~75% of per-core VMEM (96 MiB on v5e/v6e, 48 MiB on v7x)."""
    try:
        cap = int(pltpu.get_tpu_info().vmem_capacity_bytes)
    except Exception:
        cap = 64 << 20                      # conservative (v7x-sized) fallback
    return (cap * 3) // 4


def _mlp_resnet_block_kernel(
    x_ref, g_ref, b_ref, w1_ref, b1_ref, w2_ref, b2_ref,    # inputs
    o_ref,                                                   # output
    *scratch,                                                # [xn_sc[, acc_sc]]
    f_real, single_h, acc_into_out,
):
    def layer_norm():
        x = x_ref[...].astype(jnp.float32)                   # [TB, F_pad]
        f_pad = x.shape[-1]
        if f_real != f_pad:
            # Padded feature lanes are zero; LN statistics must only see the
            # real F features.
            lane = jax.lax.broadcasted_iota(jnp.int32, x.shape, 1)
            mask = lane < f_real
            inv_f = 1.0 / float(f_real)
            mean = jnp.sum(x, axis=-1, keepdims=True) * inv_f
            xc = jnp.where(mask, x - mean, 0.0)
            var = jnp.sum(xc * xc, axis=-1, keepdims=True) * inv_f
        else:
            mean = jnp.mean(x, axis=-1, keepdims=True)
            xc = x - mean
            var = jnp.mean(xc * xc, axis=-1, keepdims=True)
        xn = xc * jax.lax.rsqrt(var + 1e-5)                   # EUP rsqrt
        xn = xn * g_ref[...] + b_ref[...]                     # padded gamma/beta = 0
        return xn.astype(jnp.bfloat16)                        # bf16 MXU lhs

    def fc1_relu_fc2(xn_bf16):
        h = jnp.dot(xn_bf16, w1_ref[...], preferred_element_type=jnp.float32)
        h = jnp.maximum(h + b1_ref[...], 0.0)
        return jnp.dot(h.astype(jnp.bfloat16), w2_ref[...],
                       preferred_element_type=jnp.float32)

    if single_h:
        # Weights fully resident: one fused LN -> fc1 -> relu -> fc2 -> +res+b2.
        out = x_ref[...].astype(jnp.float32) + fc1_relu_fc2(layer_norm()) + b2_ref[...]
        o_ref[...] = out.astype(o_ref.dtype)
        return

    # Hidden dim is streamed: grid axis 1 is a reduction over H tiles.
    xn_sc = scratch[0]
    h_idx = pl.program_id(1)

    @pl.when(h_idx == 0)
    def _():
        xn_sc[...] = layer_norm()            # LN once per batch tile, reused per h

    partial = fc1_relu_fc2(xn_sc[...])

    if acc_into_out:
        # f32 output: accumulate straight into the resident o_ref block.
        @pl.when(h_idx == 0)
        def _():
            o_ref[...] = x_ref[...].astype(jnp.float32) + partial + b2_ref[...]

        @pl.when(h_idx > 0)
        def _():
            o_ref[...] += partial
    else:
        # Narrow output dtype: keep an f32 accumulator in scratch.
        acc_sc = scratch[1]

        @pl.when(h_idx == 0)
        def _():
            acc_sc[...] = partial

        @pl.when(h_idx > 0)
        def _():
            acc_sc[...] += partial

        @pl.when(h_idx == pl.num_programs(1) - 1)
        def _():
            out = x_ref[...].astype(jnp.float32) + acc_sc[...] + b2_ref[...]
            o_ref[...] = out.astype(o_ref.dtype)


def prepare_params(gamma, beta, w1, b1, w2, b2):
    """Pad/cast parameters once (hoisted out of the per-call path).

    w1: [F, 4F] (= fc1.weight.T), b1: [4F], w2: [4F, F] (= fc2.weight.T),
    b2: [F], gamma/beta: [F].
    """
    F, H = w1.shape
    F_pad = _round_up(F, 128)
    H_pad = _round_up(H, 128)
    g2 = jnp.zeros((1, F_pad), jnp.float32).at[0, :F].set(gamma.astype(jnp.float32))
    bt2 = jnp.zeros((1, F_pad), jnp.float32).at[0, :F].set(beta.astype(jnp.float32))
    w1p = jnp.zeros((F_pad, H_pad), jnp.bfloat16).at[:F, :H].set(w1.astype(jnp.bfloat16))
    b1p = jnp.zeros((1, H_pad), jnp.float32).at[0, :H].set(b1.astype(jnp.float32))
    w2p = jnp.zeros((H_pad, F_pad), jnp.bfloat16).at[:H, :F].set(w2.astype(jnp.bfloat16))
    b2p = jnp.zeros((1, F_pad), jnp.float32).at[0, :F].set(b2.astype(jnp.float32))
    return dict(F=F, H=H, F_pad=F_pad, H_pad=H_pad,
                gamma=g2, beta=bt2, w1=w1p, b1=b1p, w2=w2p, b2=b2p)


def mlp_resnet_block(x, params, *, block_b=None, block_h=None):
    """Fused MLPResNetBlock forward (inference). x: [B, F], params: prepare_params()."""
    B, F = x.shape
    assert F == params["F"], "feature dim mismatch with prepared params"
    F_pad, H_pad = params["F_pad"], params["H_pad"]
    out_dtype = x.dtype

    budget = _vmem_budget_bytes()
    if block_b is None:
        block_b = 512 if budget >= (96 << 20) else 256   # bigger tiles on v5e/v6e

    # ---- hidden tiling: keep weights resident whenever they fit the budget ----
    weight_bytes = 2 * 2 * F_pad * H_pad                  # w1 + w2, bf16
    if block_h is not None:
        TH = _pick_th(block_h, H_pad)
    elif weight_bytes <= budget // 2:
        TH = H_pad                                        # resident, no reduction axis
    else:
        TH = _pick_th(512, H_pad)

    # ---- batch tiling: minimize padding; >=2 tiles for megacore when B>=16 ----
    n_b = max(pl.cdiv(B, block_b), 2 if B >= 16 else 1)
    TB = _round_up(pl.cdiv(B, n_b), 8)

    # ---- fit the double-buffered working set inside the VMEM budget ----
    in_itemsize = jnp.dtype(x.dtype).itemsize
    out_itemsize = jnp.dtype(out_dtype).itemsize

    def _ws(tb, th):
        n_h_ = H_pad // th
        ws = 2 * tb * F_pad * (in_itemsize + out_itemsize)   # x/out double-buffered
        ws += 2 * 2 * 2 * F_pad * th                          # w1+w2 slabs (bf16, 2 bufs)
        if n_h_ > 1:
            ws += tb * F_pad * 2                              # LN scratch (bf16)
            if out_dtype != jnp.float32:
                ws += tb * F_pad * 4                          # f32 accumulator scratch
        return ws

    while _ws(TB, TH) > budget and TB > 8:
        TB = max(8, _round_up(TB // 2, 8))
    while _ws(TB, TH) > budget and TH > 128:
        TH = _pick_th(TH // 2, H_pad)

    B_pad = _round_up(B, TB)
    n_b = B_pad // TB
    n_h = H_pad // TH
    single_h = n_h == 1
    acc_into_out = out_dtype == jnp.float32

    # ---- pad x only when needed; keep its native dtype for the DMA ----
    needs_pad = (B_pad != B) or (F_pad != F)
    if needs_pad:
        xp = jnp.zeros((B_pad, F_pad), x.dtype).at[:B, :F].set(x)
    else:
        xp = x

    kernel = functools.partial(
        _mlp_resnet_block_kernel,
        f_real=F, single_h=single_h, acc_into_out=acc_into_out)

    scratch_shapes = []
    if not single_h:
        scratch_shapes.append(pltpu.VMEM((TB, F_pad), jnp.bfloat16))   # LN'd x
        if not acc_into_out:
            scratch_shapes.append(pltpu.VMEM((TB, F_pad), jnp.float32))  # f32 acc

    flops = 4 * B_pad * F_pad * H_pad                      # two matmuls, 2*M*N*K each
    stream_factor = 1 if single_h else n_b                 # weights re-streamed per batch tile
    bytes_accessed = (B_pad * F_pad * (in_itemsize + out_itemsize)
                      + stream_factor * weight_bytes
                      + (3 * F_pad + H_pad) * 4)

    out = pl.pallas_call(
        kernel,
        out_shape=jax.ShapeDtypeStruct((B_pad, F_pad), out_dtype),
        grid_spec=pltpu.PrefetchScalarGridSpec(
            num_scalar_prefetch=0,
            grid=(n_b, n_h),
            in_specs=[
                pl.BlockSpec((TB, F_pad), lambda i, h: (i, 0)),   # x (batch tile)
                pl.BlockSpec((1, F_pad), lambda i, h: (0, 0)),    # gamma (resident)
                pl.BlockSpec((1, F_pad), lambda i, h: (0, 0)),    # beta  (resident)
                pl.BlockSpec((F_pad, TH), lambda i, h: (0, h)),   # w1 slab
                pl.BlockSpec((1, TH), lambda i, h: (0, h)),       # b1 slab
                pl.BlockSpec((TH, F_pad), lambda i, h: (h, 0)),   # w2 slab
                pl.BlockSpec((1, F_pad), lambda i, h: (0, 0)),    # b2    (resident)
            ],
            out_specs=pl.BlockSpec((TB, F_pad), lambda i, h: (i, 0)),
            scratch_shapes=scratch_shapes,
        ),
        compiler_params=pltpu.CompilerParams(
            dimension_semantics=("parallel", "arbitrary"),
            vmem_limit_bytes=int(budget),
        ),
        cost_estimate=pl.CostEstimate(
            flops=flops, transcendentals=B_pad, bytes_accessed=bytes_accessed),
    )(xp, params["gamma"], params["beta"], params["w1"], params["b1"],
      params["w2"], params["b2"])

    if needs_pad:
        out = out[:B, :F]
    return out


def reference(x, gamma, beta, w1, b1, w2, b2):
    """Pure-JAX f32 reference of the PyTorch forward (inference)."""
    residual = x
    mean = jnp.mean(x, axis=-1, keepdims=True)
    var = jnp.mean((x - mean) ** 2, axis=-1, keepdims=True)
    xn = (x - mean) / jnp.sqrt(var + 1e-5) * gamma + beta
    h = jnp.maximum(xn @ w1 + b1, 0.0)
    return residual + (h @ w2 + b2)


def _make_case(key, B, F):
    H = 4 * F
    kx, k1, k2, k3, k4, k5, k6 = jax.random.split(key, 7)
    x = jax.random.normal(kx, (B, F), jnp.float32)
    gamma = jnp.ones((F,), jnp.float32) + 0.1 * jax.random.normal(k1, (F,), jnp.float32)
    beta = 0.1 * jax.random.normal(k2, (F,), jnp.float32)
    w1 = jax.random.normal(k3, (F, H), jnp.float32) / jnp.sqrt(F)    # fc1.weight.T
    b1 = 0.1 * jax.random.normal(k4, (H,), jnp.float32)              # fc1.bias
    w2 = jax.random.normal(k5, (H, F), jnp.float32) / jnp.sqrt(H)    # fc2.weight.T
    b2 = 0.1 * jax.random.normal(k6, (F,), jnp.float32)              # fc2.bias
    return x, gamma, beta, w1, b1, w2, b2


if __name__ == "__main__":
    # TODO(synk): dropout (training=True) not implemented — inference path only;
    # the `residual` Linear branch is dead code because in/out shapes always match.
    key = jax.random.PRNGKey(0)
    k_a, k_b, k_c = jax.random.split(key, 3)

    # Case A: small demo (B=8, F=32 -> H=128). Weights resident, single h step.
    x, *p = _make_case(k_a, B=8, F=32)
    params = prepare_params(*p)
    out = jax.block_until_ready(mlp_resnet_block(x, params))
    ref = reference(x, *p)
    assert out.shape == ref.shape and out.dtype == ref.dtype
    assert jnp.allclose(out, ref, atol=3e-2, rtol=3e-2), "case A mismatch"

    # Case B: force hidden-dim streaming (block_h=128 -> 2 reduction steps) and
    # 2 batch tiles (megacore) -> exercises accumulate-directly-into-o_ref path.
    x, *p = _make_case(k_b, B=16, F=64)
    params = prepare_params(*p)
    out = jax.block_until_ready(mlp_resnet_block(x, params, block_h=128))
    ref = reference(x, *p)
    assert jnp.allclose(out, ref, atol=3e-2, rtol=3e-2), "case B mismatch"

    # Case C: awkward batch (B=20) -> minimal batch padding + output slicing.
    x, *p = _make_case(k_c, B=20, F=32)
    params = prepare_params(*p)
    out = jax.block_until_ready(mlp_resnet_block(x, params))
    ref = reference(x, *p)
    assert jnp.allclose(out, ref, atol=3e-2, rtol=3e-2), "case C mismatch"

    print("KERNEL_OK")
</pallas_src>

<mosaic_0001>
module attributes {stable_mosaic.version = 11 : i64} {
  func.func @_mlp_resnet_block_kernel(%arg0: i32, %arg1: i32, %arg2: memref<8x128xf32, #tpu.memory_space<vmem>>, %arg3: memref<1x128xf32, #tpu.memory_space<vmem>>, %arg4: memref<1x128xf32, #tpu.memory_space<vmem>>, %arg5: memref<128x128xbf16, #tpu.memory_space<vmem>>, %arg6: memref<1x128xf32, #tpu.memory_space<vmem>>, %arg7: memref<128x128xbf16, #tpu.memory_space<vmem>>, %arg8: memref<1x128xf32, #tpu.memory_space<vmem>>, %arg9: memref<8x128xf32, #tpu.memory_space<vmem>>) attributes {dimension_semantics = [#tpu.dimension_semantics<parallel>, #tpu.dimension_semantics<arbitrary>], iteration_bounds = array<i64: 1, 1>, scalar_prefetch = 0 : i64, scratch_operands = 0 : i64, tpu.core_type = #tpu.core_type<tc>, window_params = [{transform_indices = @transform_0, window_bounds = array<i64: 8, 128>}, {pipeline_mode = #tpu.pipeline_mode<synchronous>, transform_indices = @transform_1, window_bounds = array<i64: 1, 128>}, {pipeline_mode = #tpu.pipeline_mode<synchronous>, transform_indices = @transform_2, window_bounds = array<i64: 1, 128>}, {transform_indices = @transform_3, window_bounds = array<i64: 128, 128>}, {transform_indices = @transform_4, window_bounds = array<i64: 1, 128>}, {transform_indices = @transform_5, window_bounds = array<i64: 128, 128>}, {pipeline_mode = #tpu.pipeline_mode<synchronous>, transform_indices = @transform_6, window_bounds = array<i64: 1, 128>}, {transform_indices = @transform_7, window_bounds = array<i64: 8, 128>}]} {
    %c0 = arith.constant 0 : index
    %c0_0 = arith.constant 0 : index
    %0 = vector.load %arg2[%c0, %c0_0] : memref<8x128xf32, #tpu.memory_space<vmem>>, vector<8x128xf32>
    %c0_1 = arith.constant 0 : index
    %c0_2 = arith.constant 0 : index
    %1 = vector.load %arg2[%c0_1, %c0_2] : memref<8x128xf32, #tpu.memory_space<vmem>>, vector<8x128xf32>
    %2 = tpu.iota {dimensions = array<i32: 1>} : vector<8x128xi32>
    %c32_i32 = arith.constant 32 : i32
    %3 = vector.broadcast %c32_i32 : i32 to vector<8x128xi32>
    %4 = arith.cmpi slt, %2, %3 : vector<8x128xi32>
    %cst = arith.constant dense<0.000000e+00> : vector<8xf32>
    %5 = vector.multi_reduction <add>, %1, %cst [1] : vector<8x128xf32> to vector<8xf32>
    %6 = vector.shape_cast %5 : vector<8xf32> to vector<8x1xf32>
    %cst_3 = arith.constant 3.125000e-02 : f32
    %7 = vector.broadcast %cst_3 : f32 to vector<8x1xf32>
    %8 = arith.mulf %6, %7 : vector<8x1xf32>
    %9 = vector.broadcast %8 : vector<8x1xf32> to vector<8x128xf32>
    %10 = arith.subf %1, %9 : vector<8x128xf32>
    %cst_4 = arith.constant 0.000000e+00 : f32
    %11 = vector.broadcast %cst_4 : f32 to vector<8x128xf32>
    %12 = arith.select %4, %10, %11 : vector<8x128xi1>, vector<8x128xf32>
    %13 = arith.mulf %12, %12 : vector<8x128xf32>
    %cst_5 = arith.constant dense<0.000000e+00> : vector<8xf32>
    %14 = vector.multi_reduction <add>, %13, %cst_5 [1] : vector<8x128xf32> to vector<8xf32>
    %15 = vector.shape_cast %14 : vector<8xf32> to vector<8x1xf32>
    %cst_6 = arith.constant 3.125000e-02 : f32
    %16 = vector.broadcast %cst_6 : f32 to vector<8x1xf32>
    %17 = arith.mulf %15, %16 : vector<8x1xf32>
    %cst_7 = arith.constant 9.99999974E-6 : f32
    %18 = vector.broadcast %cst_7 : f32 to vector<8x1xf32>
    %19 = arith.addf %17, %18 : vector<8x1xf32>
    %20 = math.rsqrt %19 : vector<8x1xf32>
    %21 = vector.broadcast %20 : vector<8x1xf32> to vector<8x128xf32>
    %22 = arith.mulf %12, %21 : vector<8x128xf32>
    %c0_8 = arith.constant 0 : index
    %c0_9 = arith.constant 0 : index
    %23 = vector.load %arg3[%c0_8, %c0_9] : memref<1x128xf32, #tpu.memory_space<vmem>>, vector<1x128xf32>
    %24 = vector.broadcast %23 : vector<1x128xf32> to vector<8x128xf32>
    %25 = arith.mulf %22, %24 : vector<8x128xf32>
    %c0_10 = arith.constant 0 : index
    %c0_11 = arith.constant 0 : index
    %26 = vector.load %arg4[%c0_10, %c0_11] : memref<1x128xf32, #tpu.memory_space<vmem>>, vector<1x128xf32>
    %27 = vector.broadcast %26 : vector<1x128xf32> to vector<8x128xf32>
    %28 = arith.addf %25, %27 : vector<8x128xf32>
    %29 = arith.truncf %28 : vector<8x128xf32> to vector<8x128xbf16>
    %c0_12 = arith.constant 0 : index
    %c0_13 = arith.constant 0 : index
    %30 = vector.load %arg5[%c0_12, %c0_13] : memref<128x128xbf16, #tpu.memory_space<vmem>>, vector<128x128xbf16>
    %cst_14 = arith.constant dense<0.000000e+00> : vector<8x128xf32>
    %31 = tpu.matmul %29, %30, %cst_14 {dimension_numbers = #tpu.dot_dimension_numbers<[1], [0], [0], [1], [0, 0, 1, 1], [], []>} : vector<8x128xbf16>, vector<128x128xbf16>, vector<8x128xf32> -> vector<8x128xf32>
    %c0_15 = arith.constant 0 : index
    %c0_16 = arith.constant 0 : index
    %32 = vector.load %arg6[%c0_15, %c0_16] : memref<1x128xf32, #tpu.memory_space<vmem>>, vector<1x128xf32>
    %33 = vector.broadcast %32 : vector<1x128xf32> to vector<8x128xf32>
    %34 = arith.addf %31, %33 : vector<8x128xf32>
    %cst_17 = arith.constant 0.000000e+00 : f32
    %35 = vector.broadcast %cst_17 : f32 to vector<8x128xf32>
    %36 = arith.maximumf %34, %35 : vector<8x128xf32>
    %37 = arith.truncf %36 : vector<8x128xf32> to vector<8x128xbf16>
    %c0_18 = arith.constant 0 : index
    %c0_19 = arith.constant 0 : index
    %38 = vector.load %arg7[%c0_18, %c0_19] : memref<128x128xbf16, #tpu.memory_space<vmem>>, vector<128x128xbf16>
    %cst_20 = arith.constant dense<0.000000e+00> : vector<8x128xf32>
    %39 = tpu.matmul %37, %38, %cst_20 {dimension_numbers = #tpu.dot_dimension_numbers<[1], [0], [0], [1], [0, 0, 1, 1], [], []>} : vector<8x128xbf16>, vector<128x128xbf16>, vector<8x128xf32> -> vector<8x128xf32>
    %40 = arith.addf %0, %39 : vector<8x128xf32>
    %c0_21 = arith.constant 0 : index
    %c0_22 = arith.constant 0 : index
    %41 = vector.load %arg8[%c0_21, %c0_22] : memref<1x128xf32, #tpu.memory_space<vmem>>, vector<1x128xf32>
    %42 = vector.broadcast %41 : vector<1x128xf32> to vector<8x128xf32>
    %43 = arith.addf %40, %42 : vector<8x128xf32>
    %c0_23 = arith.constant 0 : index
    %c0_24 = arith.constant 0 : index
    %44 = vector.load %arg9[%c0_23, %c0_24] : memref<8x128xf32, #tpu.memory_space<vmem>>, vector<8x128xf32>
    tpu.vector_store %arg9[%c0_23, %c0_24], %43 {strides = array<i32>} : memref<8x128xf32, #tpu.memory_space<vmem>>, vector<8x128xf32>,
    return
  }
  func.func @transform_0(%arg0: i32, %arg1: i32) -> (i32, i32) {
    %c0_i32 = arith.constant 0 : i32
    %c0_i32_0 = arith.constant 0 : i32
    return %arg0, %c0_i32 : i32, i32
  }
  func.func @transform_1(%arg0: i32, %arg1: i32) -> (i32, i32) {
    %c0_i32 = arith.constant 0 : i32
    %c0_i32_0 = arith.constant 0 : i32
    %c0_i32_1 = arith.constant 0 : i32
    return %c0_i32, %c0_i32_0 : i32, i32
  }
  func.func @transform_2(%arg0: i32, %arg1: i32) -> (i32, i32) {
    %c0_i32 = arith.constant 0 : i32
    %c0_i32_0 = arith.constant 0 : i32
    %c0_i32_1 = arith.constant 0 : i32
    return %c0_i32, %c0_i32_0 : i32, i32
  }
  func.func @transform_3(%arg0: i32, %arg1: i32) -> (i32, i32) {
    %c0_i32 = arith.constant 0 : i32
    %c0_i32_0 = arith.constant 0 : i32
    return %c0_i32, %arg1 : i32, i32
  }
  func.func @transform_4(%arg0: i32, %arg1: i32) -> (i32, i32) {
    %c0_i32 = arith.constant 0 : i32
    %c0_i32_0 = arith.constant 0 : i32
    return %c0_i32, %arg1 : i32, i32
  }
  func.func @transform_5(%arg0: i32, %arg1: i32) -> (i32, i32) {
    %c0_i32 = arith.constant 0 : i32
    %c0_i32_0 = arith.constant 0 : i32
    return %arg1, %c0_i32 : i32, i32
  }
  func.func @transform_6(%arg0: i32, %arg1: i32) -> (i32, i32) {
    %c0_i32 = arith.constant 0 : i32
    %c0_i32_0 = arith.constant 0 : i32
    %c0_i32_1 = arith.constant 0 : i32
    return %c0_i32, %c0_i32_0 : i32, i32
  }
  func.func @transform_7(%arg0: i32, %arg1: i32) -> (i32, i32) {
    %c0_i32 = arith.constant 0 : i32
    %c0_i32_0 = arith.constant 0 : i32
    return %arg0, %c0_i32 : i32, i32
  }
}

</mosaic_0001>

<bundles_post_ra>
// kernel: tpu_custom_call.1
= control target key start
LH: loop header
LB: loop body
LE: loop exit
PB: predicated region body
PF: predicated region fallthrough
CT: control target
= control target key end

     0   :  { %12 = vsyncpa [#allocation3], 0  ;;  %s678_s0 = inlined_call_operand.hbm [shape: f32[8,128], index: 0, kind: input, shape index: {}]   ;;  %s679_s1 = inlined_call_operand.vmem [shape: f32[1,128], index: 1, kind: input, shape index: {}]   ;;  %s680_s2 = inlined_call_operand.vmem [shape: f32[1,128], index: 2, kind: input, shape index: {}]   ;;  %s681_s3 = inlined_call_operand.hbm [shape: bf16[128,128], index: 3, kind: input, shape index: {}]   ;;  %s682_s4 = inlined_call_operand.vmem [shape: f32[1,128], index: 4, kind: input, shape index: {}]   ;;  %s683_s5 = inlined_call_operand.hbm [shape: bf16[128,128], index: 5, kind: input, shape index: {}]   ;;  %s684_s6 = inlined_call_operand.vmem [shape: f32[1,128], index: 6, kind: input, shape index: {}]   ;;  %s685_s7 = inlined_call_operand.hbm [shape: f32[8,128], index: 7, kind: output, shape index: {}]  }
   0x1   :  { %13 = vsyncpa [#allocation6], 0 }
   0x2   :  { %14 = vsyncpa [#allocation4], 0  ;;  %s541_s24 = smov [#allocation5]   ;;  %s447_s28 = scalar_lea.hbm %s681_s3, 1024 }
   0x3   :  { %s34_s25 = sshll.u32 %s541_s24, 4  ;;  %p448_p0 = scmp.ne.s32.totalorder %s681_s3, %s447_s28  ;;  %s35_s25 = int_to_ptr.vmem [resolvable:$true] %s34_s25 }
   0x4   :  { %p451_p1 = scmp.lt.u32.totalorder %s447_s28, %s681_s3 }
   0x6   :  { %p453_p2 = pnand %p451_p1, %p448_p0 }
   0x8   :  { %456 = shalt.err (!%p453_p2)
}
   0x9   :  { %s457_s10 = scalar_lea.vmem %s35_s25, 1024  ;;  %p462_p4 = scmp.lt.s32.totalorder %s35_s25, %s35_s25 }
   0xa   :  { %p458_p3 = scmp.ne.s32.totalorder %s35_s25, %s457_s10  ;;  %p463_p5 = scmp.lt.s32.totalorder %s457_s10, %s457_s10 }
   0xc   :  { %p464_p6 = por %p463_p5, %p462_p4 }
   0xe   :  { %p465_p7 = pnand %p464_p6, %p458_p3 }
  0x10   :  { %468 = shalt.err (!%p465_p7)
}
  0x11   :  { %s542_s11 = smov 64   ;;  %s543_s12 = smov 4  }
  0x12   :  { %40 = dma.hbm_to_vmem [thread:$0]  %s681_s3, 1024, %s35_s25, [#allocation6], %s542_s11, %s542_s11, %s543_s12  }
  0x13   :  { %s544_s15 = smov [#allocation2]   ;;  %s545_s17 = smov [#allocation7]  }
  0x14   :  { %s21_s16 = sshll.u32 %s544_s15, 4  ;;  %s48_s18 = sshll.u32 %s545_s17, 4  ;;  %s22_s16 = int_to_ptr.vmem [resolvable:$true] %s21_s16  ;;  %s49_s18 = int_to_ptr.vmem [resolvable:$true] %s48_s18 }
  0x15   :  { %s469_s21 = scalar_lea.hbm %s678_s0, 128 }
  0x16   :  { %p470_p8 = scmp.ne.s32.totalorder %s678_s0, %s469_s21  ;;  %p473_p9 = scmp.lt.u32.totalorder %s469_s21, %s678_s0 }
  0x18   :  { %p475_p10 = pnand %p473_p9, %p470_p8 }
  0x1a   :  { %478 = shalt.err (!%p475_p10)
}
  0x1b   :  { %s479_s3 = scalar_lea.vmem %s22_s16, 128  ;;  %p484_p12 = scmp.lt.s32.totalorder %s22_s16, %s22_s16 }
  0x1c   :  { %p480_p11 = scmp.ne.s32.totalorder %s22_s16, %s479_s3  ;;  %p485_p13 = scmp.lt.s32.totalorder %s479_s3, %s479_s3 }
  0x1e   :  { %p486_p0 = por %p485_p13, %p484_p12 }
  0x20   :  { %p487_p1 = pnand %p486_p0, %p480_p11 }
  0x22   :  { %490 = shalt.err (!%p487_p1)
}
  0x23   :  { %24 = dma.hbm_to_vmem [thread:$0]  %s678_s0, 128, %s22_s16, [#allocation3]  }
  0x24   :  { %s491_s30 = scalar_lea.hbm %s683_s5, 1024 }
  0x25   :  { %p492_p2 = scmp.ne.s32.totalorder %s683_s5, %s491_s30  ;;  %p495_p3 = scmp.lt.u32.totalorder %s491_s30, %s683_s5 }
  0x27   :  { %p497_p4 = pnand %p495_p3, %p492_p2 }
  0x29   :  { %500 = shalt.err (!%p497_p4)
}
  0x2a   :  { %s501_s14 = scalar_lea.vmem %s49_s18, 1024  ;;  %p506_p6 = scmp.lt.s32.totalorder %s49_s18, %s49_s18 }
  0x2b   :  { %p502_p5 = scmp.ne.s32.totalorder %s49_s18, %s501_s14  ;;  %p507_p7 = scmp.lt.s32.totalorder %s501_s14, %s501_s14 }
  0x2d   :  { %p508_p8 = por %p507_p7, %p506_p6 }
  0x2f   :  { %p509_p9 = pnand %p508_p8, %p502_p5 }
  0x31   :  { %512 = shalt.err (!%p509_p9)
}
  0x32   :  { %54 = dma.hbm_to_vmem [thread:$0]  %s683_s5, 1024, %s49_s18, [#allocation6], %s542_s11, %s542_s11, %s543_s12  }
  0x33   :  { %535 = dma.done.wait [#allocation3], 128  }
  0x34   :  { %536 = vsyncadd [#allocation3], 4294967168 }
  0x35   :  { %537 = dma.done.wait [#allocation6], 2048  }
  0x36   :  { %538 = vsyncadd [#allocation6], 4294965248  ;;  %v631_v0 = vld [vmem:[#allocation2] sm:$0xff]  ;;  %v429_v1 = vld [vmem:[#allocation5] sm:$0xff]   ;;  %v546_v2 = vmov 0.0   ;;  %v68_v4 = vlaneseq  ;;  %vm547_vm1 = vmmov 0  }
  0x37   :  { %71 = vadd.xlane.f32.xlu0 %v631_v0  ;;  %381 = vmatprep.subr.bf16.mxu0 %v546_v2  ;;  %v430_v3 = vld [vmem:[#allocation5 + $0x8] sm:$0xff]   ;;  %v431_v11 = vld [vmem:[#allocation5 + $0x10] sm:$0xff]   ;;  %v432_v12 = vld [vmem:[#allocation5 + $0x18] sm:$0xff]   ;;  %s548_s19 = smov [#allocation8]  }
  0x38   :  { %401 = vmatprep.subr.bf16.mxu1 %v546_v2  ;;  %382 = vmatpush3.bf16.msra.mxu0 %v429_v1  ;;  %v69_v5 = vand.u32 127, %v68_v4  ;;  %v433_v13 = vld [vmem:[#allocation5 + $0x20] sm:$0xff]   ;;  %v434_v14 = vld [vmem:[#allocation5 + $0x28] sm:$0xff]   ;;  %v435_v15 = vld [vmem:[#allocation5 + $0x30] sm:$0xff]   ;;  %s333_s20 = sshll.u32 %s548_s19, 4  ;;  %s334_s20 = int_to_ptr.vmem [resolvable:$true] %s333_s20 }
  0x39   :  { %383 = vmatprep.subr.bf16.mxu0 %v546_v2  ;;  %397 = vmatprep.mubr.msk.bf16.mxu0 %vm547_vm1, %v546_v2  ;;  %v436_v16 = vld [vmem:[#allocation5 + $0x38] sm:$0xff]   ;;  %v437_v17 = vld [vmem:[#allocation7] sm:$0xff]   ;;  %v438_v18 = vld [vmem:[#allocation7 + $0x8] sm:$0xff]   ;;  %p518_p11 = scmp.lt.s32.totalorder %s334_s20, %s334_s20 }
  0x3a   :  { %vm70_vm0 = vcmp.lt.s32.totalorder %v69_v5, 32  ;;  %417 = vmatprep.mubr.msk.bf16.mxu1 %vm547_vm1, %v546_v2  ;;  %402 = vmatpush3.bf16.msra.mxu1 %v437_v17  ;;  %v439_v19 = vld [vmem:[#allocation7 + $0x10] sm:$0xff]   ;;  %v440_v20 = vld [vmem:[#allocation7 + $0x18] sm:$0xff]   ;;  %v441_v21 = vld [vmem:[#allocation7 + $0x20] sm:$0xff]  }
  0x3b   :  { %403 = vmatprep.subr.bf16.mxu1 %v546_v2  ;;  %v442_v22 = vld [vmem:[#allocation7 + $0x28] sm:$0xff]   ;;  %v343_v27 = vld [vmem:[%s679_s1] ss:$0 sm:$0xff]  ;;  %v443_v33 = vld [vmem:[#allocation7 + $0x30] sm:$0xff]  }
  0x3c   :  { %384 = vmatpush3.bf16.msra.mxu0 %v430_v3  ;;  %v344_v29 = vld [vmem:[%s680_s2] ss:$0 sm:$0xff] }
  0x3d   :  { %385 = vmatprep.subr.bf16.mxu0 %v546_v2  ;;  %v444_v34 = vld [vmem:[#allocation7 + $0x38] sm:$0xff]  }
  0x3e   :  { %404 = vmatpush3.bf16.msra.mxu1 %v438_v18  ;;  %v345_v35 = vld [vmem:[%s682_s4] ss:$0 sm:$0xff]  ;;  %s513_s4 = scalar_lea.vmem %s334_s20, 128 }
  0x3f   :  { %405 = vmatprep.subr.bf16.mxu1 %v546_v2  ;;  %v362_v44 = vld [vmem:[%s684_s6] ss:$0 sm:$0xff]  ;;  %p514_p10 = scmp.ne.s32.totalorder %s334_s20, %s513_s4  ;;  %p519_p12 = scmp.lt.s32.totalorder %s513_s4, %s513_s4 }
  0x40   :  { %386 = vmatpush3.bf16.msra.mxu0 %v431_v11 }
  0x41   :  { %387 = vmatprep.subr.bf16.mxu0 %v546_v2  ;;  %p520_p13 = por %p519_p12, %p518_p11 }
  0x42   :  { %406 = vmatpush3.bf16.msra.mxu1 %v439_v19 }
  0x43   :  { %407 = vmatprep.subr.bf16.mxu1 %v546_v2  ;;  %p521_p0 = pnand %p520_p13, %p514_p10 }
  0x44   :  { %388 = vmatpush3.bf16.msra.mxu0 %v432_v12 }
  0x45   :  { %389 = vmatprep.subr.bf16.mxu0 %v546_v2 }
  0x46   :  { %408 = vmatpush3.bf16.msra.mxu1 %v440_v20 }
  0x47   :  { %409 = vmatprep.subr.bf16.mxu1 %v546_v2 }
  0x48   :  { %390 = vmatpush3.bf16.msra.mxu0 %v433_v13 }
  0x49   :  { %391 = vmatprep.subr.bf16.mxu0 %v546_v2 }
  0x4a   :  { %410 = vmatpush3.bf16.msra.mxu1 %v441_v21 }
  0x4b   :  { %411 = vmatprep.subr.bf16.mxu1 %v546_v2 }
  0x4c   :  { %392 = vmatpush3.bf16.msra.mxu0 %v434_v14 }
  0x4d   :  { %393 = vmatprep.subr.bf16.mxu0 %v546_v2 }
  0x4e   :  { %412 = vmatpush3.bf16.msra.mxu1 %v442_v22 }
  0x4f   :  { %413 = vmatprep.subr.bf16.mxu1 %v546_v2 }
  0x50   :  { %394 = vmatpush3.bf16.msra.mxu0 %v435_v15 }
  0x51   :  { %395 = vmatprep.subr.bf16.mxu0 %v546_v2 }
  0x52   :  { %414 = vmatpush3.bf16.msra.mxu1 %v443_v33 }
  0x53   :  { %415 = vmatprep.subr.bf16.mxu1 %v546_v2 }
  0x54   :  { %396 = vmatpush3.bf16.msra.mxu0 %v436_v16 }
  0x56   :  { %416 = vmatpush3.bf16.msra.mxu1 %v444_v34 }
  0xc4   :  { %v72_v6 = vpop.xlane.xlu0 %71 }
  0xc5   :  { %v73_v7 = vmul.f32 0.03125, %v72_v6 }
  0xc7   :  { %v74_v8 = vsub.f32 %v631_v0, %v73_v7 }
  0xc9   :  { %v75_v9 = vsel %vm70_vm0, %v74_v8, 0.0 }
  0xca   :  { %v76_v10 = vmul.f32 %v75_v9, %v75_v9 }
  0xcc   :  { %77 = vadd.xlane.f32.xlu0 %v76_v10 }
 0x159   :  { %v78_v23 = vpop.xlane.xlu0 %77 }
 0x15a   :  { %v79_v24 = vmul.f32 0.03125, %v78_v23 }
 0x15c   :  { %v80_v25 = vadd.f32 1e-05, %v79_v24 }
 0x15e   :  { %445 = vrsqrt.f32 %v80_v25 }
 0x168   :  { %v446_v26 = vpop.eup %445 }
 0x169   :  { %v82_v28 = vmul.f32 %v446_v26, %v75_v9 }
 0x16b   :  { %v90_v30 = vmul.f32 %v343_v27, %v82_v28 }
 0x16d   :  { %v98_v31 = vadd.f32 %v344_v29, %v90_v30 }
 0x16f   :  { %v99_v32 = vpack.c.bf16 %v98_v31, %v98_v31 }
 0x171   :  { %398 = vmatmul.mubr.bf16.vlgmr.msra.gmra.mrb[0].mxu0 %v99_v32 }
 0x244   :  { %v205_v36 = vpop.f32.mrb[0].mxu0 }
 0x245   :  { %v206_v37 = vadd.f32 %v345_v35, %v205_v36  ;;  %v399_v38 = vpop.f32.mrb[1].mxu0 }
 0x246   :  { %v208_v39 = vpop.f32.mrb[2].mxu0 }
 0x247   :  { %v211_v40 = vmax.f32 %v206_v37, 0.0  ;;  %v400_v41 = vpop.f32.mrb[3].mxu0 }
 0x249   :  { %v212_v42 = vpack.c.bf16 %v211_v40, %v211_v40 }
 0x24b   :  { %418 = vmatmul.mubr.bf16.vlgmr.msra.gmra.mrb[0].mxu1 %v212_v42 }
 0x31e   :  { %v311_v43 = vpop.f32.mrb[0].mxu1 }
 0x31f   :  { %v317_v45 = vadd.f32 %v311_v43, %v631_v0  ;;  %v419_v46 = vpop.f32.mrb[1].mxu1 }
 0x320   :  { %v314_v47 = vpop.f32.mrb[2].mxu1 }
 0x321   :  { %v325_v48 = vadd.f32 %v362_v44, %v317_v45  ;;  %v420_v49 = vpop.f32.mrb[3].mxu1 }
 0x323   :  { %326 = vst [vmem:[#allocation8] sm:$0xff] %v325_v48 }
 0x324   :  { %524 = shalt.err (!%p521_p0)
}
 0x325   :  { %s525_s6 = scalar_lea.hbm %s685_s7, 128 }
 0x326   :  { %p526_p1 = scmp.ne.s32.totalorder %s685_s7, %s525_s6  ;;  %p529_p2 = scmp.lt.u32.totalorder %s525_s6, %s685_s7 }
 0x328   :  { %p531_p3 = pnand %p529_p2, %p526_p1 }
 0x32a   :  { %534 = shalt.err (!%p531_p3)
}
 0x32b   :  { %336 = dma.vmem_to_hbm [thread:$0]  %s334_s20, 128, %s685_s7, [#allocation4]  }
 0x32c   :  { %539 = dma.done.wait [#allocation4], 128  }
 0x32d   :  { %540 = vsyncadd [#allocation4], 4294967168 }
 0x32e   :  { %340 = vsyncpa [#allocation3], 1 }
 0x32f   :  { %341 = vsyncpa [#allocation6], 1 }
 0x330   :  { %342 = vsyncpa [#allocation4], 1 }

</bundles_post_ra>
